<compile_context>
chip_gen: v6e
topology: v6e:2x2x1
jax: 0.10.0
libtpu: 0.0.40
codegen_flags: <defaults>
</compile_context>

<pallas_src>
import functools
import math

import jax
import jax.numpy as jnp
from jax import lax
from jax.experimental import pallas as pl
from jax.experimental.pallas import tpu as pltpu

BN_EPS = 1e-5
EXPANSION = 4

# Tile caps. TN/TK=256 matches v6e/v7x 256x256 MXU geometry (128-wide tiles
# also fine on v5e since 256 is a multiple of its 128 MXU); TM up to 512 keeps
# the bf16 working set ~2.3 MiB — far under the 32 MiB scoped-VMEM default and
# v7x's 64 MiB physical VMEM.
_TM_CAP = 512
_TNK_CAP = 256
_VMEM_LIMIT = 32 * 1024 * 1024


def _round_up(x, m):
    return ((x + m - 1) // m) * m


# ----------------------------------------------------------------------------
# Pallas kernels
# ----------------------------------------------------------------------------
def _mm_kernel(x_ref, w_ref, b_ref, *rest, activation, has_residual):
    """Fused matmul (bf16 in, f32 acc) + bias + optional residual + activation."""
    if has_residual:
        res_ref, o_ref, acc_ref = rest
    else:
        o_ref, acc_ref = rest
    k = pl.program_id(2)

    @pl.when(k == 0)
    def _():
        acc_ref[...] = jnp.zeros_like(acc_ref)

    acc_ref[...] += jnp.dot(x_ref[...], w_ref[...],
                            preferred_element_type=jnp.float32)

    @pl.when(k == pl.num_programs(2) - 1)
    def _():
        y = acc_ref[...] + b_ref[...]
        if has_residual:
            y = y + res_ref[...].astype(jnp.float32)
        if activation == "relu":
            y = jnp.maximum(y, 0.0)
        o_ref[...] = y.astype(o_ref.dtype)


def matmul_fused(x, w_padded, bias_padded, *, n_out, activation="none",
                 residual=None, out_dtype=jnp.bfloat16):
    """out = act((x @ w_padded) + bias [+ residual])[:, :n_out].

    x: [M, K] bf16 (unpadded).  w_padded: [Kp, Np] bf16 (K/N padded to 128s,
    BN scale folded in).  bias_padded: [Np] f32.  residual: [M, n_out] or None.
    """
    M, K = x.shape
    Kp, Np = w_padded.shape

    TM = min(_TM_CAP, _round_up(max(M, 1), 16))
    Mp = _round_up(M, TM)
    TK = _TNK_CAP if Kp % _TNK_CAP == 0 else 128
    TN = _TNK_CAP if Np % _TNK_CAP == 0 else 128

    xp = x.astype(jnp.bfloat16)
    if (Mp, Kp) != (M, K):
        xp = jnp.pad(xp, ((0, Mp - M), (0, Kp - K)))
    bias2 = bias_padded.reshape(1, Np)

    inputs = [xp, w_padded, bias2]
    in_specs = [
        pl.BlockSpec((TM, TK), lambda i, j, k: (i, k)),
        pl.BlockSpec((TK, TN), lambda i, j, k: (k, j)),
        pl.BlockSpec((1, TN), lambda i, j, k: (0, j)),
    ]
    has_res = residual is not None
    if has_res:
        rp = residual.astype(jnp.bfloat16)
        rM, rN = rp.shape
        if (Mp, Np) != (rM, rN):
            rp = jnp.pad(rp, ((0, Mp - rM), (0, Np - rN)))
        inputs.append(rp)
        in_specs.append(pl.BlockSpec((TM, TN), lambda i, j, k: (i, j)))

    out = pl.pallas_call(
        functools.partial(_mm_kernel, activation=activation,
                          has_residual=has_res),
        out_shape=jax.ShapeDtypeStruct((Mp, Np), out_dtype),
        grid_spec=pltpu.PrefetchScalarGridSpec(
            num_scalar_prefetch=0,
            grid=(Mp // TM, Np // TN, Kp // TK),
            in_specs=in_specs,
            out_specs=pl.BlockSpec((TM, TN), lambda i, j, k: (i, j)),
            scratch_shapes=[pltpu.VMEM((TM, TN), jnp.float32)],
        ),
        compiler_params=pltpu.CompilerParams(
            dimension_semantics=("parallel", "parallel", "arbitrary"),
            vmem_limit_bytes=_VMEM_LIMIT),
    )(*inputs)
    return out[:M, :n_out]


def _se_res_relu_kernel(x_ref, g_ref, r_ref, o_ref):
    """out = relu(x * gate + residual); gate broadcast over rows."""
    y = x_ref[...].astype(jnp.float32) * g_ref[...] \
        + r_ref[...].astype(jnp.float32)
    o_ref[...] = jnp.maximum(y, 0.0).astype(o_ref.dtype)


def se_residual_relu(x, gate, residual):
    """x, residual: [N, H, W, C] bf16; gate: [N, C] f32 → bf16 [N, H, W, C]."""
    N, H, W, C = x.shape
    HW = H * W
    Cp = _round_up(C, 128)
    TR = min(512, _round_up(HW, 16))
    HWp = _round_up(HW, TR)

    xr = x.reshape(N, HW, C)
    rr = residual.reshape(N, HW, C)
    if (HWp, Cp) != (HW, C):
        xr = jnp.pad(xr, ((0, 0), (0, HWp - HW), (0, Cp - C)))
        rr = jnp.pad(rr, ((0, 0), (0, HWp - HW), (0, Cp - C)))
    gr = jnp.pad(gate.astype(jnp.float32),
                 ((0, 0), (0, Cp - C))).reshape(N, 1, Cp)

    out = pl.pallas_call(
        _se_res_relu_kernel,
        out_shape=jax.ShapeDtypeStruct((N, HWp, Cp), jnp.bfloat16),
        grid=(N, HWp // TR),
        in_specs=[pl.BlockSpec((1, TR, Cp), lambda n, r: (n, r, 0)),
                  pl.BlockSpec((1, 1, Cp), lambda n, r: (n, 0, 0)),
                  pl.BlockSpec((1, TR, Cp), lambda n, r: (n, r, 0))],
        out_specs=pl.BlockSpec((1, TR, Cp), lambda n, r: (n, r, 0)),
        compiler_params=pltpu.CompilerParams(
            dimension_semantics=("parallel", "parallel"),
            vmem_limit_bytes=_VMEM_LIMIT),
    )(xr, gr, rr)
    return out[:, :HW, :C].reshape(N, H, W, C)


# ----------------------------------------------------------------------------
# Conv wrappers (slicing glue + fused Pallas matmul)
# ----------------------------------------------------------------------------
def conv1x1_bn_act(x, w_padded, bias_padded, n_out, stride=1,
                   activation="relu", residual=None):
    N, H, W, C = x.shape
    if stride > 1:
        x = x[:, ::stride, ::stride, :]
        H, W = x.shape[1], x.shape[2]
    y = matmul_fused(x.reshape(N * H * W, C), w_padded, bias_padded,
                     n_out=n_out, activation=activation, residual=residual)
    return y.reshape(N, H, W, n_out)


def conv3x3_bn_act(x, w_padded, bias_padded, n_out, stride=1,
                   activation="relu"):
    # TODO(synk): 3x3 taps are still gathered via im2col (bf16, so half the
    # bytes of the previous f32 version); folding the 9 taps into the matmul
    # K grid axis (shifted-window index_maps) would remove this HBM traffic.
    N, H, W, C = x.shape
    oh = (H + 2 - 3) // stride + 1
    ow = (W + 2 - 3) // stride + 1
    xp = jnp.pad(x, ((0, 0), (1, 1), (1, 1), (0, 0)))
    cols = [xp[:, di:di + (oh - 1) * stride + 1:stride,
               dj:dj + (ow - 1) * stride + 1:stride, :]
            for di in range(3) for dj in range(3)]
    patches = jnp.concatenate(cols, axis=-1).reshape(N * oh * ow, 9 * C)
    y = matmul_fused(patches, w_padded, bias_padded, n_out=n_out,
                     activation=activation)
    return y.reshape(N, oh, ow, n_out)


def stem_forward(params, x_nhwc):
    # TODO(synk): 9x9 stem conv is lowered via lax.conv_general_dilated (XLA)
    # rather than Pallas im2col — avoids the 81x patch blowup in HBM. BN is
    # folded into the (bf16) conv weights; bias + ReLU applied in f32.
    y = lax.conv_general_dilated(
        x_nhwc.astype(jnp.bfloat16), params["stem_w"],
        window_strides=(2, 2), padding=((4, 4), (4, 4)),
        dimension_numbers=("NHWC", "HWIO", "NHWC"),
        preferred_element_type=jnp.float32)
    return jnp.maximum(y + params["stem_b"][None, None, None, :], 0.0)


def maxpool_3x3_s2_p1(x):
    # TODO(synk): maxpool kept as lax.reduce_window (window glue, not hot path)
    return lax.reduce_window(x, -jnp.inf, lax.max,
                             window_dimensions=(1, 3, 3, 1),
                             window_strides=(1, 2, 2, 1),
                             padding=((0, 0), (1, 1), (1, 1), (0, 0)))


# ----------------------------------------------------------------------------
# Raw parameter construction (deterministic, matches PyTorch init scheme)
# ----------------------------------------------------------------------------
def make_bn(c):
    # gamma=1, beta=0 (constant init); running_mean=0, running_var=1 (eval)
    return (jnp.ones((c,), jnp.float32), jnp.zeros((c,), jnp.float32),
            jnp.zeros((c,), jnp.float32), jnp.ones((c,), jnp.float32))


def kaiming_conv(key, cout, cin, kh, kw):
    fan_out = cout * kh * kw
    std = math.sqrt(2.0 / fan_out)
    return jax.random.normal(key, (cout, cin, kh, kw), jnp.float32) * std


def make_bottleneck(nk, inplanes, planes, stride, downsample, use_se,
                    se_reduction):
    p = {"stride": stride}
    out_c = planes * EXPANSION
    p["conv1_w"] = kaiming_conv(nk(), planes, inplanes, 1, 1)
    p["bn1"] = make_bn(planes)
    p["conv2_w"] = kaiming_conv(nk(), planes, planes, 3, 3)
    p["bn2"] = make_bn(planes)
    p["conv3_w"] = kaiming_conv(nk(), out_c, planes, 1, 1)
    p["bn3"] = make_bn(out_c)
    if downsample:
        p["ds_w"] = kaiming_conv(nk(), out_c, inplanes, 1, 1)
        p["ds_bn"] = make_bn(out_c)
    if use_se:
        cr = max(out_c // se_reduction, 1)
        p["se_w1"] = kaiming_conv(nk(), cr, out_c, 1, 1)
        p["se_b1"] = jnp.zeros((cr,), jnp.float32)
        p["se_w2"] = kaiming_conv(nk(), out_c, cr, 1, 1)
        p["se_b2"] = jnp.zeros((out_c,), jnp.float32)
    return p


def make_resnetrs_params(key, layers, num_classes=10, use_se=True,
                         se_reduction=32):
    cnt = [0]

    def nk():
        cnt[0] += 1
        return jax.random.fold_in(key, cnt[0])

    params = {}
    inplanes = 64
    params["conv1_w"] = kaiming_conv(nk(), 64, 3, 9, 9)
    params["bn1"] = make_bn(64)
    layer_cfgs = [(64, layers[0], 1), (128, layers[1], 2),
                  (256, layers[2], 2), (512, layers[3], 2)]
    all_layers = []
    for planes, nblocks, stride in layer_cfgs:
        blocks = []
        for bi in range(nblocks):
            s = stride if bi == 0 else 1
            ds = bi == 0 and (s != 1 or inplanes != planes * EXPANSION)
            blocks.append(make_bottleneck(nk, inplanes, planes, s, ds,
                                          use_se, se_reduction))
            inplanes = planes * EXPANSION
        all_layers.append(blocks)
    params["layers"] = all_layers
    fan_in = 512 * EXPANSION
    bound = 1.0 / math.sqrt(fan_in)
    params["fc_w"] = jax.random.uniform(nk(), (fan_in, num_classes),
                                        minval=-bound, maxval=bound)
    params["fc_b"] = jax.random.uniform(nk(), (num_classes,),
                                        minval=-bound, maxval=bound)
    return params


# ----------------------------------------------------------------------------
# One-time inference prep: fold BN into weights, transpose to [K, N],
# pre-pad to (Kp, Np) multiples of 128, cast to bf16.
# ----------------------------------------------------------------------------
def _prep_conv(w, bn):
    cout, cin, kh, kw = w.shape
    gamma, beta, mean, var = bn
    scale = gamma / jnp.sqrt(var + BN_EPS)
    bias = beta - mean * scale
    w2d = jnp.transpose(w, (2, 3, 1, 0)).reshape(kh * kw * cin, cout)
    w2d = w2d * scale[None, :]
    K, Nn = w2d.shape
    Kp, Np = _round_up(K, 128), _round_up(Nn, 128)
    w2d = jnp.pad(w2d, ((0, Kp - K), (0, Np - Nn))).astype(jnp.bfloat16)
    bias_p = jnp.pad(bias, (0, Np - Nn)).astype(jnp.float32)
    return w2d, bias_p, Nn


def prepare_inference_params(raw):
    prep = {}
    gamma, beta, mean, var = raw["bn1"]
    scale = gamma / jnp.sqrt(var + BN_EPS)
    prep["stem_w"] = (jnp.transpose(raw["conv1_w"], (2, 3, 1, 0))
                      * scale).astype(jnp.bfloat16)          # [9,9,3,64]
    prep["stem_b"] = (beta - mean * scale).astype(jnp.float32)
    layers = []
    for layer in raw["layers"]:
        blocks = []
        for p in layer:
            q = {"stride": p["stride"]}
            q["w1"], q["b1"], q["n1"] = _prep_conv(p["conv1_w"], p["bn1"])
            q["w2"], q["b2"], q["n2"] = _prep_conv(p["conv2_w"], p["bn2"])
            q["w3"], q["b3"], q["n3"] = _prep_conv(p["conv3_w"], p["bn3"])
            if "ds_w" in p:
                q["wd"], q["bd"], q["nd"] = _prep_conv(p["ds_w"], p["ds_bn"])
            if "se_w1" in p:
                cr, c = p["se_w1"].shape[0], p["se_w1"].shape[1]
                q["se_w1"] = p["se_w1"].reshape(cr, c).T.astype(jnp.float32)
                q["se_b1"] = p["se_b1"].astype(jnp.float32)
                q["se_w2"] = p["se_w2"].reshape(c, cr).T.astype(jnp.float32)
                q["se_b2"] = p["se_b2"].astype(jnp.float32)
            blocks.append(q)
        layers.append(blocks)
    prep["layers"] = layers
    prep["fc_w"] = raw["fc_w"].astype(jnp.float32)
    prep["fc_b"] = raw["fc_b"].astype(jnp.float32)
    return prep


# ----------------------------------------------------------------------------
# Forward pass
# ----------------------------------------------------------------------------
def bottleneck_forward(p, x, use_se):
    N = x.shape[0]
    stride = p["stride"]
    out = conv1x1_bn_act(x, p["w1"], p["b1"], p["n1"], 1, "relu")
    out = conv3x3_bn_act(out, p["w2"], p["b2"], p["n2"], stride, "relu")
    if "wd" in p:
        identity = conv1x1_bn_act(x, p["wd"], p["bd"], p["nd"], stride, "none")
    else:
        identity = x
    oh, ow = out.shape[1], out.shape[2]
    n3 = p["n3"]
    if use_se and "se_w1" in p:
        out3 = conv1x1_bn_act(out, p["w3"], p["b3"], n3, 1, "none")
        # SE squeeze/excite: tiny (M=batch) latency-bound FCs — plain jnp.
        s = jnp.mean(out3.astype(jnp.float32), axis=(1, 2))
        h = jax.nn.relu(s @ p["se_w1"] + p["se_b1"])
        g = jax.nn.sigmoid(h @ p["se_w2"] + p["se_b2"])
        return se_residual_relu(out3, g, identity)
    # No SE: fuse residual add + ReLU into the conv3 matmul epilogue.
    res = identity.reshape(N * oh * ow, n3)
    return conv1x1_bn_act(out, p["w3"], p["b3"], n3, 1, "relu", residual=res)


def resnetrs_forward(params, x_nchw, use_se=True):
    x = jnp.transpose(x_nchw, (0, 2, 3, 1))          # NCHW -> NHWC
    x = stem_forward(params, x)                      # conv1(9x9,s2)+bn+relu
    x = maxpool_3x3_s2_p1(x)                         # 3x3 s2 p1 maxpool
    x = x.astype(jnp.bfloat16)
    for layer in params["layers"]:
        for blk in layer:
            x = bottleneck_forward(blk, x, use_se)
    x = jnp.mean(x.astype(jnp.float32), axis=(1, 2))  # adaptive avgpool + flat
    # Final FC: M=batch rows only — latency-bound, plain jnp (per perf review).
    logits = x @ params["fc_w"] + params["fc_b"]
    return logits


if __name__ == "__main__":
    key = jax.random.PRNGKey(0)
    raw = make_resnetrs_params(key, layers=[1, 1, 1, 1], num_classes=10,
                               use_se=True, se_reduction=32)
    params = prepare_inference_params(raw)
    x = jax.random.normal(jax.random.fold_in(key, 999), (2, 3, 32, 32),
                          jnp.float32)
    out = resnetrs_forward(params, x, use_se=True)
    out = jax.block_until_ready(out)
    assert out.shape == (2, 10), out.shape
    print("KERNEL_OK")
</pallas_src>

<mosaic_0001>
module attributes {stable_mosaic.version = 11 : i64} {
  func.func @_mm_kernel(%arg0: i32, %arg1: i32, %arg2: i32, %arg3: memref<128x128xbf16, #tpu.memory_space<vmem>>, %arg4: memref<128x128xbf16, #tpu.memory_space<vmem>>, %arg5: memref<1x128xf32, #tpu.memory_space<vmem>>, %arg6: memref<128x128xbf16, #tpu.memory_space<vmem>>, %arg7: memref<128x128xf32, #tpu.memory_space<vmem>>) attributes {dimension_semantics = [#tpu.dimension_semantics<parallel>, #tpu.dimension_semantics<parallel>, #tpu.dimension_semantics<arbitrary>], iteration_bounds = array<i64: 1, 1, 1>, scalar_prefetch = 0 : i64, scratch_operands = 1 : i64, tpu.core_type = #tpu.core_type<tc>, window_params = [{transform_indices = @transform_0, window_bounds = array<i64: 128, 128>}, {transform_indices = @transform_1, window_bounds = array<i64: 128, 128>}, {transform_indices = @transform_2, window_bounds = array<i64: 1, 128>}, {transform_indices = @transform_3, window_bounds = array<i64: 128, 128>}]} {
    %c0_i32 = arith.constant 0 : i32
    %0 = arith.cmpi eq, %arg2, %c0_i32 : i32
    %1 = arith.extui %0 : i1 to i32
    %c0_i32_0 = arith.constant 0 : i32
    %2 = arith.cmpi ne, %1, %c0_i32_0 : i32
    scf.if %2 {
      %cst_10 = arith.constant 0.000000e+00 : f32
      %12 = vector.broadcast %cst_10 : f32 to vector<128x128xf32>
      %c0_11 = arith.constant 0 : index
      %c0_12 = arith.constant 0 : index
      %13 = vector.load %arg7[%c0_11, %c0_12] : memref<128x128xf32, #tpu.memory_space<vmem>>, vector<128x128xf32>
      tpu.vector_store %arg7[%c0_11, %c0_12], %12 {strides = array<i32>} : memref<128x128xf32, #tpu.memory_space<vmem>>, vector<128x128xf32>,
    } else {
    }
    %c0 = arith.constant 0 : index
    %c0_1 = arith.constant 0 : index
    %3 = vector.load %arg7[%c0, %c0_1] : memref<128x128xf32, #tpu.memory_space<vmem>>, vector<128x128xf32>
    %c0_2 = arith.constant 0 : index
    %c0_3 = arith.constant 0 : index
    %4 = vector.load %arg3[%c0_2, %c0_3] : memref<128x128xbf16, #tpu.memory_space<vmem>>, vector<128x128xbf16>
    %c0_4 = arith.constant 0 : index
    %c0_5 = arith.constant 0 : index
    %5 = vector.load %arg4[%c0_4, %c0_5] : memref<128x128xbf16, #tpu.memory_space<vmem>>, vector<128x128xbf16>
    %cst = arith.constant dense<0.000000e+00> : vector<128x128xf32>
    %6 = tpu.matmul %4, %5, %cst {dimension_numbers = #tpu.dot_dimension_numbers<[1], [0], [0], [1], [0, 0, 1, 1], [], []>} : vector<128x128xbf16>, vector<128x128xbf16>, vector<128x128xf32> -> vector<128x128xf32>
    %7 = arith.addf %3, %6 : vector<128x128xf32>
    %c0_6 = arith.constant 0 : index
    %c0_7 = arith.constant 0 : index
    %8 = vector.load %arg7[%c0_6, %c0_7] : memref<128x128xf32, #tpu.memory_space<vmem>>, vector<128x128xf32>
    tpu.vector_store %arg7[%c0_6, %c0_7], %7 {strides = array<i32>} : memref<128x128xf32, #tpu.memory_space<vmem>>, vector<128x128xf32>,
    %c0_i32_8 = arith.constant 0 : i32
    %9 = arith.cmpi eq, %arg2, %c0_i32_8 : i32
    %10 = arith.extui %9 : i1 to i32
    %c0_i32_9 = arith.constant 0 : i32
    %11 = arith.cmpi ne, %10, %c0_i32_9 : i32
    scf.if %11 {
      %c0_10 = arith.constant 0 : index
      %c0_11 = arith.constant 0 : index
      %12 = vector.load %arg7[%c0_10, %c0_11] : memref<128x128xf32, #tpu.memory_space<vmem>>, vector<128x128xf32>
      %c0_12 = arith.constant 0 : index
      %c0_13 = arith.constant 0 : index
      %13 = vector.load %arg5[%c0_12, %c0_13] : memref<1x128xf32, #tpu.memory_space<vmem>>, vector<1x128xf32>
      %14 = vector.broadcast %13 : vector<1x128xf32> to vector<128x128xf32>
      %15 = arith.addf %12, %14 : vector<128x128xf32>
      %cst_14 = arith.constant 0.000000e+00 : f32
      %16 = vector.broadcast %cst_14 : f32 to vector<128x128xf32>
      %17 = arith.maximumf %15, %16 : vector<128x128xf32>
      %18 = arith.truncf %17 : vector<128x128xf32> to vector<128x128xbf16>
      %c0_15 = arith.constant 0 : index
      %c0_16 = arith.constant 0 : index
      %19 = vector.load %arg6[%c0_15, %c0_16] : memref<128x128xbf16, #tpu.memory_space<vmem>>, vector<128x128xbf16>
      tpu.vector_store %arg6[%c0_15, %c0_16], %18 {strides = array<i32>} : memref<128x128xbf16, #tpu.memory_space<vmem>>, vector<128x128xbf16>,
    } else {
    }
    return
  }
  func.func @transform_0(%arg0: i32, %arg1: i32, %arg2: i32) -> (i32, i32) {
    %c0_i32 = arith.constant 0 : i32
    return %arg0, %arg2 : i32, i32
  }
  func.func @transform_1(%arg0: i32, %arg1: i32, %arg2: i32) -> (i32, i32) {
    %c0_i32 = arith.constant 0 : i32
    return %arg2, %arg1 : i32, i32
  }
  func.func @transform_2(%arg0: i32, %arg1: i32, %arg2: i32) -> (i32, i32) {
    %c0_i32 = arith.constant 0 : i32
    %c0_i32_0 = arith.constant 0 : i32
    return %c0_i32, %arg1 : i32, i32
  }
  func.func @transform_3(%arg0: i32, %arg1: i32, %arg2: i32) -> (i32, i32) {
    %c0_i32 = arith.constant 0 : i32
    return %arg0, %arg1 : i32, i32
  }
}

</mosaic_0001>

<bundles_post_ra>
// kernel: tpu_custom_call.1
= control target key start
LH: loop header
LB: loop body
LE: loop exit
PB: predicated region body
PF: predicated region fallthrough
CT: control target
= control target key end

     0   :  { %8 = vsyncpa [#allocation4], 0  ;;  %s786_s0 = inlined_call_operand.hbm [shape: bf16[128,128], index: 0, kind: input, shape index: {}]   ;;  %s787_s1 = inlined_call_operand.hbm [shape: bf16[128,128], index: 1, kind: input, shape index: {}]   ;;  %s788_s2 = inlined_call_operand.vmem [shape: f32[1,128], index: 2, kind: input, shape index: {}]   ;;  %s789_s3 = inlined_call_operand.hbm [shape: bf16[128,128], index: 3, kind: output, shape index: {}]  }
   0x1   :  { %9 = vsyncpa [#allocation7], 0 }
   0x2   :  { %10 = vsyncpa [#allocation5], 0  ;;  %s740_s12 = smov [#allocation3]  }
   0x3   :  { %s16_s13 = sshll.u32 %s740_s12, 4  ;;  %s17_s13 = int_to_ptr.vmem [resolvable:$true] %s16_s13 }
   0x4   :  { %s682_s14 = scalar_lea.vmem %s17_s13, 1024  ;;  %p687_p1 = scmp.lt.s32.totalorder %s17_s13, %s17_s13 }
   0x5   :  { %p683_p0 = scmp.ne.s32.totalorder %s17_s13, %s682_s14  ;;  %p688_p2 = scmp.lt.s32.totalorder %s682_s14, %s682_s14 }
   0x7   :  { %p689_p3 = por %p688_p2, %p687_p1 }
   0x9   :  { %p690_p4 = pnand %p689_p3, %p683_p0 }
   0xb   :  { %693 = shalt.err (!%p690_p4)
}
   0xc   :  { %s741_s15 = smov 64   ;;  %s742_s16 = smov 4  }
   0xd   :  { %22 = dma.hbm_to_vmem [thread:$0]  %s786_s0, 1024, %s17_s13, [#allocation4], %s741_s15, %s741_s15, %s742_s16  }
   0xe   :  { %s743_s19 = smov [#allocation6]  }
   0xf   :  { %s28_s20 = sshll.u32 %s743_s19, 4  ;;  %s29_s20 = int_to_ptr.vmem [resolvable:$true] %s28_s20 }
  0x10   :  { %s702_s21 = scalar_lea.vmem %s29_s20, 1024  ;;  %p707_p6 = scmp.lt.s32.totalorder %s29_s20, %s29_s20 }
  0x11   :  { %p703_p5 = scmp.ne.s32.totalorder %s29_s20, %s702_s21  ;;  %p708_p7 = scmp.lt.s32.totalorder %s702_s21, %s702_s21 }
  0x13   :  { %p709_p8 = por %p708_p7, %p707_p6 }
  0x15   :  { %p710_p9 = pnand %p709_p8, %p703_p5 }
  0x17   :  { %713 = shalt.err (!%p710_p9)
}
  0x18   :  { %34 = dma.hbm_to_vmem [thread:$0]  %s787_s1, 1024, %s29_s20, [#allocation7], %s741_s15, %s741_s15, %s742_s16  }
  0x19   :  { %734 = dma.done.wait [#allocation4], 1024  }
  0x1a   :  { %735 = vsyncadd [#allocation4], 4294966272 }
  0x1b   :  { %736 = dma.done.wait [#allocation7], 1024  }
  0x1c   :  { %737 = vsyncadd [#allocation7], 4294966272  ;;  %v658_v0 = vld [vmem:[#allocation6 + $0x38] sm:$0xff]   ;;  %v659_v1 = vld [vmem:[#allocation6 + $0x30] sm:$0xff]  }
  0x1d   :  { %605 = vmatprep.subr.bf16.mxu0 %v658_v0  ;;  %637 = vmatprep.subr.bf16.mxu1 %v658_v0  ;;  %v660_v2 = vld [vmem:[#allocation6 + $0x28] sm:$0xff]   ;;  %v661_v3 = vld [vmem:[#allocation6 + $0x20] sm:$0xff]   ;;  %v662_v6 = vld [vmem:[#allocation6 + $0x18] sm:$0xff]  }
  0x1e   :  { %606 = vmatpush3.bf16.msra.mxu0 %v658_v0  ;;  %645 = vmatpush3.bf16.msra.mxu1 %v658_v0  ;;  %v666_v4 = vld [vmem:[#allocation3] sm:$0xff]   ;;  %v663_v7 = vld [vmem:[#allocation6 + $0x10] sm:$0xff]   ;;  %v664_v8 = vld [vmem:[#allocation6 + $0x8] sm:$0xff]  }
  0x1f   :  { %607 = vmatprep.subr.bf16.mxu0 %v659_v1  ;;  %638 = vmatprep.subr.bf16.mxu1 %v659_v1  ;;  %v667_v5 = vld [vmem:[#allocation3 + $0x20] sm:$0xff]   ;;  %v668_v10 = vld [vmem:[#allocation3 + $0x8] sm:$0xff]   ;;  %v670_v12 = vld [vmem:[#allocation3 + $0x10] sm:$0xff]  }
  0x20   :  { %621 = vmatprep.mubr.bf16.mxu0 %v666_v4  ;;  %629 = vmatprep.mubr.bf16.mxu1 %v667_v5  ;;  %v665_v9 = vld [vmem:[#allocation6] sm:$0xff]   ;;  %v669_v11 = vld [vmem:[#allocation3 + $0x28] sm:$0xff]   ;;  %v671_v13 = vld [vmem:[#allocation3 + $0x30] sm:$0xff]  }
  0x21   :  { %v672_v14 = vld [vmem:[#allocation3 + $0x18] sm:$0xff]   ;;  %v509_v16 = vld [vmem:[%s788_s2] ss:$0 sm:$0xff]  ;;  %s744_s2 = smov [#allocation8]  }
  0x22   :  { %608 = vmatpush3.bf16.msra.mxu0 %v659_v1  ;;  %646 = vmatpush3.bf16.msra.mxu1 %v659_v1  ;;  %v673_v15 = vld [vmem:[#allocation3 + $0x38] sm:$0xff]   ;;  %s480_s24 = sshll.u32 %s744_s2, 4  ;;  %s481_s24 = int_to_ptr.vmem [resolvable:$true] %s480_s24 }
  0x23   :  { %609 = vmatprep.subr.bf16.mxu0 %v660_v2  ;;  %639 = vmatprep.subr.bf16.mxu1 %v660_v2  ;;  %s714_s25 = scalar_lea.vmem %s481_s24, 1024  ;;  %p719_p11 = scmp.lt.s32.totalorder %s481_s24, %s481_s24 }
  0x24   :  { %p715_p10 = scmp.ne.s32.totalorder %s481_s24, %s714_s25  ;;  %p720_p12 = scmp.lt.s32.totalorder %s714_s25, %s714_s25 }
  0x26   :  { %610 = vmatpush3.bf16.msra.mxu0 %v660_v2  ;;  %647 = vmatpush3.bf16.msra.mxu1 %v660_v2  ;;  %p721_p13 = por %p720_p12, %p719_p11 }
  0x27   :  { %611 = vmatprep.subr.bf16.mxu0 %v661_v3  ;;  %640 = vmatprep.subr.bf16.mxu1 %v661_v3 }
  0x28   :  { %p722_p0 = pnand %p721_p13, %p715_p10 }
  0x2a   :  { %612 = vmatpush3.bf16.msra.mxu0 %v661_v3  ;;  %648 = vmatpush3.bf16.msra.mxu1 %v661_v3 }
  0x2b   :  { %613 = vmatprep.subr.bf16.mxu0 %v662_v6  ;;  %641 = vmatprep.subr.bf16.mxu1 %v662_v6 }
  0x2e   :  { %614 = vmatpush3.bf16.msra.mxu0 %v662_v6  ;;  %649 = vmatpush3.bf16.msra.mxu1 %v662_v6 }
  0x2f   :  { %615 = vmatprep.subr.bf16.mxu0 %v663_v7  ;;  %642 = vmatprep.subr.bf16.mxu1 %v663_v7 }
  0x32   :  { %616 = vmatpush3.bf16.msra.mxu0 %v663_v7  ;;  %650 = vmatpush3.bf16.msra.mxu1 %v663_v7 }
  0x33   :  { %617 = vmatprep.subr.bf16.mxu0 %v664_v8  ;;  %643 = vmatprep.subr.bf16.mxu1 %v664_v8 }
  0x36   :  { %618 = vmatpush3.bf16.msra.mxu0 %v664_v8  ;;  %651 = vmatpush3.bf16.msra.mxu1 %v664_v8 }
  0x37   :  { %619 = vmatprep.subr.bf16.mxu0 %v665_v9  ;;  %644 = vmatprep.subr.bf16.mxu1 %v665_v9 }
  0x3a   :  { %620 = vmatpush3.bf16.msra.mxu0 %v665_v9  ;;  %652 = vmatpush3.bf16.msra.mxu1 %v665_v9 }
  0x3d   :  { %622 = vmatmul.mubr.bf16.vlgmr.msra.gmra.mxu0 %v668_v10  ;;  %630 = vmatmul.mubr.bf16.vlgmr.msra.gmra.mxu1 %v669_v11 }
  0x3e   :  { %625 = vmatprep.mubr.bf16.mxu0 %v670_v12  ;;  %633 = vmatprep.mubr.bf16.mxu1 %v671_v13 }
  0x45   :  { %626 = vmatmul.mubr.bf16.gmra.mxu0 %v672_v14  ;;  %634 = vmatmul.mubr.bf16.gmra.mxu1 %v673_v15 }
  0xfd   :  { %v623_v17 = vpop.f32.mrf.mxu0  ;;  %v631_v18 = vpop.f32.mrf.mxu1 }
  0xfe   :  { %v365_v19 = vadd.f32 %v623_v17, %v509_v16  ;;  %v373_v20 = vadd.f32 %v631_v18, %v509_v16 }
  0xff   :  { %v242_v21 = vpop.f32.mrf.mxu0  ;;  %v274_v22 = vpop.f32.mrf.mxu1 }
 0x100   :  { %v363_v23 = vadd.f32 %v509_v16, %v242_v21  ;;  %v371_v24 = vadd.f32 %v509_v16, %v274_v22  ;;  %v381_v29 = vmax.f32 %v365_v19, 0.0  ;;  %v389_v30 = vmax.f32 %v373_v20, 0.0 }
 0x101   :  { %v624_v25 = vpop.f32.mrf.mxu0  ;;  %v632_v26 = vpop.f32.mrf.mxu1 }
 0x102   :  { %v366_v27 = vadd.f32 %v624_v25, %v509_v16  ;;  %v374_v28 = vadd.f32 %v632_v26, %v509_v16  ;;  %v379_v37 = vmax.f32 %v363_v23, 0.0  ;;  %v387_v38 = vmax.f32 %v371_v24, 0.0 }
 0x103   :  { %v245_v31 = vpop.f32.mrf.mxu0  ;;  %v277_v32 = vpop.f32.mrf.mxu1 }
 0x104   :  { %v382_v33 = vmax.f32 %v366_v27, 0.0  ;;  %v390_v34 = vmax.f32 %v374_v28, 0.0  ;;  %v364_v35 = vadd.f32 %v509_v16, %v245_v31  ;;  %v372_v36 = vadd.f32 %v509_v16, %v277_v32 }
 0x105   :  { %v627_v39 = vpop.f32.mrf.mxu0  ;;  %v635_v40 = vpop.f32.mrf.mxu1 }
 0x106   :  { %v550_v41 = vpack.c.bf16 %v382_v33, %v381_v29  ;;  %v570_v42 = vpack.c.bf16 %v390_v34, %v389_v30  ;;  %v380_v43 = vmax.f32 %v364_v35, 0.0  ;;  %v388_v44 = vmax.f32 %v372_v36, 0.0 }
 0x107   :  { %v369_v45 = vadd.f32 %v627_v39, %v509_v16  ;;  %v377_v46 = vadd.f32 %v635_v40, %v509_v16  ;;  %v258_v47 = vpop.f32.mrf.mxu0  ;;  %v290_v48 = vpop.f32.mrf.mxu1 }
 0x108   :  { %582 = vst [vmem:[#allocation8 + $0x8] sm:$0xff] %v550_v41   ;;  %586 = vst [vmem:[#allocation8 + $0x28] sm:$0xff] %v570_v42   ;;  %v545_v49 = vpack.c.bf16 %v380_v43, %v379_v37  ;;  %v565_v50 = vpack.c.bf16 %v388_v44, %v387_v38  ;;  %v367_v51 = vadd.f32 %v509_v16, %v258_v47 }
 0x109   :  { %v375_v52 = vadd.f32 %v509_v16, %v290_v48  ;;  %v628_v53 = vpop.f32.mrf.mxu0  ;;  %v636_v54 = vpop.f32.mrf.mxu1  ;;  %v385_v57 = vmax.f32 %v369_v45, 0.0  ;;  %v393_v58 = vmax.f32 %v377_v46, 0.0 }
 0x10a   :  { %546 = vst [vmem:[#allocation8] sm:$0xff] %v545_v49   ;;  %585 = vst [vmem:[#allocation8 + $0x20] sm:$0xff] %v565_v50   ;;  %v370_v55 = vadd.f32 %v628_v53, %v509_v16  ;;  %v378_v56 = vadd.f32 %v636_v54, %v509_v16  ;;  %v383_v1 = vmax.f32 %v367_v51, 0.0 }
 0x10b   :  { %v261_v59 = vpop.f32.mrf.mxu0  ;;  %v293_v60 = vpop.f32.mrf.mxu1  ;;  %v391_v2 = vmax.f32 %v375_v52, 0.0 }
 0x10c   :  { %v386_v61 = vmax.f32 %v370_v55, 0.0  ;;  %v394_v62 = vmax.f32 %v378_v56, 0.0  ;;  %v368_v63 = vadd.f32 %v509_v16, %v261_v59  ;;  %v376_v0 = vadd.f32 %v509_v16, %v293_v60 }
 0x10e   :  { %v560_v3 = vpack.c.bf16 %v386_v61, %v385_v57  ;;  %v580_v4 = vpack.c.bf16 %v394_v62, %v393_v58  ;;  %v384_v5 = vmax.f32 %v368_v63, 0.0  ;;  %v392_v6 = vmax.f32 %v376_v0, 0.0 }
 0x110   :  { %584 = vst [vmem:[#allocation8 + $0x18] sm:$0xff] %v560_v3   ;;  %588 = vst [vmem:[#allocation8 + $0x38] sm:$0xff] %v580_v4   ;;  %v555_v7 = vpack.c.bf16 %v384_v5, %v383_v1  ;;  %v575_v8 = vpack.c.bf16 %v392_v6, %v391_v2 }
 0x112   :  { %583 = vst [vmem:[#allocation8 + $0x10] sm:$0xff] %v555_v7   ;;  %587 = vst [vmem:[#allocation8 + $0x30] sm:$0xff] %v575_v8  }
 0x113   :  { %725 = shalt.err (!%p722_p0)
}
 0x114   :  { %486 = dma.vmem_to_hbm [thread:$0]  %s481_s24, 1024, %s789_s3, [#allocation5], %s741_s15, %s741_s15, %s742_s16  }
 0x115   :  { %738 = dma.done.wait [#allocation5], 1024  }
 0x116   :  { %739 = vsyncadd [#allocation5], 4294966272 }
 0x117   :  { %490 = vsyncpa [#allocation4], 1 }
 0x118   :  { %491 = vsyncpa [#allocation7], 1 }
 0x119   :  { %492 = vsyncpa [#allocation5], 1 }

</bundles_post_ra>
